<compile_context>
chip_gen: v6e
topology: v6e:2x2x1
jax: 0.10.0
libtpu: 0.0.40
codegen_flags: <defaults>
</compile_context>

<pallas_src>
import functools

import jax
import jax.numpy as jnp
from jax import lax
from jax.experimental import pallas as pl
from jax.experimental.pallas import tpu as pltpu


def _resblock_kernel(x_ref, w1_ref, w2_ref, w3_ref, b1_ref, b2_ref,
                     masks_ref, alpha_ref, o_ref, a_ref, *, H, W, C, LW):
    """One batch-block: activations laid out (C, LW), LW = imgs_per_block*H*W."""
    alpha = alpha_ref[0, 0]

    def prelu(v):
        return jnp.where(v > 0, v, alpha * v)

    x = x_ref[...]                                        # (C, LW), residual

    # ---- conv1 (1x1, BN1 scale pre-folded into w1) + bias + PReLU --------
    y = jnp.dot(w1_ref[...], x, preferred_element_type=jnp.float32)
    y = prelu(y + b1_ref[...])

    # ---- conv2 (3x3, pad=1, BN2 scale pre-folded) + bias + PReLU ---------
    # im2col: 9 lane-rotated copies of y (XLU rolls — a slot that is otherwise
    # idle), wrapped/padding taps zeroed by the precomputed border masks, each
    # written into a persistent (9C, LW) VMEM slab -> one MXU matmul, K = 9C.
    k = 0
    for sh in (-1, 0, 1):
        for sw in (-1, 0, 1):
            d = sh * W + sw
            shift = (-d) % LW                             # win[p] = y[p + d]
            win = pltpu.roll(y, shift, axis=1) if shift else y
            if d != 0:
                win = win * masks_ref[pl.ds(k, 1), :]     # zero padding taps
            a_ref[pl.ds(k * C, C), :] = win
            k += 1

    z = jnp.dot(w2_ref[...], a_ref[...], preferred_element_type=jnp.float32)
    z = prelu(z + b2_ref[...])

    # ---- conv3 (1x1, no bias) + residual add + PReLU ----------------------
    o = jnp.dot(w3_ref[...], z, preferred_element_type=jnp.float32)
    o_ref[...] = prelu(o + x)


def _num_tensorcores():
    """Best-effort TensorCores-per-chip guess: 2 on v7x, else 1 (v5e/v6e)."""
    try:
        kind = jax.devices()[0].device_kind.lower()
    except Exception:
        return 1
    return 2 if ("v7" in kind or "7x" in kind) else 1


def resblock_pallas(x, w1, w2, w3, s1, b1, s2, b2, alpha):
    """x: (N, C, H, W) NCHW; w1/w3: (C, C, 1, 1), w2: (C, C, 3, 3) in OIHW
    (PyTorch layout); s*/b*: (C,) folded BatchNorm scale/shift; alpha scalar."""
    N, C, H, W = x.shape
    HW = H * W

    # Batch-block count: single-TC chips get one wide block (no per-grid-step
    # overhead, widest lane dim); v7x shards the batch across its two TCs.
    NB = min(N, _num_tensorcores())
    while N % NB:
        NB -= 1
    NB = max(NB, 1)
    per = N // NB
    LW = per * HW
    if NB > 1 and LW % 128:
        NB, per, LW = 1, N, N * HW                        # keep lane-dense blocks

    # Activations: NCHW -> (C, N*HW): spatial(*batch) on the lane axis.
    x_flat = x.reshape(N, C, HW).transpose(1, 0, 2).reshape(C, N * HW)

    # Fold the BatchNorm scales into the conv weights (numerics-identical;
    # removes two (C,LW) VPU multiplies + lane broadcasts from the kernel).
    w1k = w1.reshape(C, C) * s1[:, None]
    # OIHW -> (out, 9*in): column index = (kh*3 + kw)*C + ci.
    w2k = jnp.transpose(w2, (0, 2, 3, 1)).reshape(C, 9 * C) * s2[:, None]
    w3k = w3.reshape(C, C)
    b1k = b1.reshape(C, 1)
    b2k = b2.reshape(C, 1)
    alphak = jnp.asarray(alpha, jnp.float32).reshape(1, 1)

    # Precompute the 9 border masks once in the wrapper (static for fixed H,W
    # and identical for every grid step) instead of iota/div/mod per step.
    pos = jnp.arange(LW, dtype=jnp.int32)
    p = pos % HW
    h_idx = p // W
    w_idx = p % W
    ones = jnp.ones((LW,), jnp.float32)
    rows = []
    for sh in (-1, 0, 1):
        for sw in (-1, 0, 1):
            vh = None if sh == 0 else (h_idx >= 1 if sh < 0 else h_idx <= H - 2)
            vw = None if sw == 0 else (w_idx >= 1 if sw < 0 else w_idx <= W - 2)
            if vh is None and vw is None:
                rows.append(ones)
            elif vh is None:
                rows.append(vw.astype(jnp.float32))
            elif vw is None:
                rows.append(vh.astype(jnp.float32))
            else:
                rows.append((vh & vw).astype(jnp.float32))
    masks = jnp.stack(rows, axis=0)                       # (9, LW)

    kernel = functools.partial(_resblock_kernel, H=H, W=W, C=C, LW=LW)

    flops = 2 * N * HW * C * (C + 9 * C + C)              # three matmuls
    bytes_accessed = 4 * (2 * N * C * HW + 2 * C * C + 9 * C * C + 2 * C
                          + 9 * LW)
    cost = pl.CostEstimate(flops=flops, transcendentals=0,
                           bytes_accessed=bytes_accessed)

    out = pl.pallas_call(
        kernel,
        out_shape=jax.ShapeDtypeStruct((C, N * HW), jnp.float32),
        grid_spec=pltpu.PrefetchScalarGridSpec(
            num_scalar_prefetch=0,
            grid=(NB,),
            in_specs=[
                pl.BlockSpec((C, LW), lambda n: (0, n)),
                # Constant block index -> weights / biases / masks stay
                # resident in VMEM across the grid loop (no per-step re-DMA).
                pl.BlockSpec((C, C), lambda n: (0, 0)),
                pl.BlockSpec((C, 9 * C), lambda n: (0, 0)),
                pl.BlockSpec((C, C), lambda n: (0, 0)),
                pl.BlockSpec((C, 1), lambda n: (0, 0)),
                pl.BlockSpec((C, 1), lambda n: (0, 0)),
                pl.BlockSpec((9, LW), lambda n: (0, 0)),
                pl.BlockSpec(memory_space=pltpu.SMEM),
            ],
            out_specs=pl.BlockSpec((C, LW), lambda n: (0, n)),
            scratch_shapes=[pltpu.VMEM((9 * C, LW), jnp.float32)],
        ),
        compiler_params=pltpu.CompilerParams(
            dimension_semantics=("parallel",)),
        cost_estimate=cost,
    )(x_flat, w1k, w2k, w3k, b1k, b2k, masks, alphak)

    return out.reshape(C, N, HW).transpose(1, 0, 2).reshape(N, C, H, W)


def resblock_ref(x, w1, w2, w3, s1, b1, s2, b2, alpha):
    """Pure-JAX reference (NCHW / OIHW), inference-mode BN."""
    dn = ('NCHW', 'OIHW', 'NCHW')

    def prelu(v):
        return jnp.where(v > 0, v, alpha * v)

    def bn(v, s, b):
        return v * s[None, :, None, None] + b[None, :, None, None]

    y = lax.conv_general_dilated(x, w1, (1, 1), 'VALID', dimension_numbers=dn)
    y = prelu(bn(y, s1, b1))
    z = lax.conv_general_dilated(y, w2, (1, 1), ((1, 1), (1, 1)),
                                 dimension_numbers=dn)
    z = prelu(bn(z, s2, b2))
    o = lax.conv_general_dilated(z, w3, (1, 1), 'VALID', dimension_numbers=dn)
    return prelu(o + x)


if __name__ == "__main__":
    # ResBlock residual add requires inChannals == outChannals.
    N, C, H, W = 2, 8, 16, 16

    key = jax.random.PRNGKey(0)
    keys = jax.random.split(key, 8)

    x = jax.random.normal(keys[0], (N, C, H, W), jnp.float32)

    # Conv weights (OIHW), no bias - matches nn.Conv2d(..., bias=False).
    w1 = jax.random.normal(keys[1], (C, C, 1, 1), jnp.float32) * 0.1
    w2 = jax.random.normal(keys[2], (C, C, 3, 3), jnp.float32) * 0.1
    w3 = jax.random.normal(keys[3], (C, C, 1, 1), jnp.float32) * 0.1

    # BatchNorm (inference): fold gamma/beta/running stats into scale & shift.
    eps = 1e-5
    gamma1 = jax.random.normal(keys[4], (C,), jnp.float32) * 0.1 + 1.0
    beta1 = jax.random.normal(keys[5], (C,), jnp.float32) * 0.1
    mean1 = jax.random.normal(keys[6], (C,), jnp.float32) * 0.1
    var1 = jnp.abs(jax.random.normal(keys[7], (C,), jnp.float32)) * 0.1 + 1.0
    s1 = gamma1 / jnp.sqrt(var1 + eps)
    b1 = beta1 - mean1 * s1

    gamma2 = jnp.linspace(0.9, 1.1, C, dtype=jnp.float32)
    beta2 = jnp.linspace(-0.05, 0.05, C, dtype=jnp.float32)
    mean2 = jnp.linspace(-0.1, 0.1, C, dtype=jnp.float32)
    var2 = jnp.linspace(0.9, 1.2, C, dtype=jnp.float32)
    s2 = gamma2 / jnp.sqrt(var2 + eps)
    b2 = beta2 - mean2 * s2

    # PReLU: single shared parameter, PyTorch default init 0.25.
    alpha = jnp.float32(0.25)

    out = resblock_pallas(x, w1, w2, w3, s1, b1, s2, b2, alpha)
    out = jax.block_until_ready(out)

    ref = resblock_ref(x, w1, w2, w3, s1, b1, s2, b2, alpha)
    assert out.shape == (N, C, H, W)
    assert jnp.allclose(out, ref, rtol=1e-4, atol=1e-4), "mismatch vs reference"

    print("KERNEL_OK")
</pallas_src>

<mosaic_0001>
module attributes {stable_mosaic.version = 11 : i64} {
  func.func @_resblock_kernel(%arg0: i32, %arg1: memref<8x512xf32, #tpu.memory_space<vmem>>, %arg2: memref<8x8xf32, #tpu.memory_space<vmem>>, %arg3: memref<8x72xf32, #tpu.memory_space<vmem>>, %arg4: memref<8x8xf32, #tpu.memory_space<vmem>>, %arg5: memref<8x1xf32, #tpu.memory_space<vmem>>, %arg6: memref<8x1xf32, #tpu.memory_space<vmem>>, %arg7: memref<9x512xf32, #tpu.memory_space<vmem>>, %arg8: memref<1x1xf32, #tpu.memory_space<smem>>, %arg9: memref<8x512xf32, #tpu.memory_space<vmem>>, %arg10: memref<72x512xf32, #tpu.memory_space<vmem>>) attributes {dimension_semantics = [#tpu.dimension_semantics<parallel>], iteration_bounds = array<i64: 1>, scalar_prefetch = 0 : i64, scratch_operands = 1 : i64, tpu.core_type = #tpu.core_type<tc>, window_params = [{transform_indices = @transform_0, window_bounds = array<i64: 8, 512>}, {pipeline_mode = #tpu.pipeline_mode<synchronous>, transform_indices = @transform_1, window_bounds = array<i64: 8, 8>}, {pipeline_mode = #tpu.pipeline_mode<synchronous>, transform_indices = @transform_2, window_bounds = array<i64: 8, 72>}, {pipeline_mode = #tpu.pipeline_mode<synchronous>, transform_indices = @transform_3, window_bounds = array<i64: 8, 8>}, {pipeline_mode = #tpu.pipeline_mode<synchronous>, transform_indices = @transform_4, window_bounds = array<i64: 8, 1>}, {pipeline_mode = #tpu.pipeline_mode<synchronous>, transform_indices = @transform_5, window_bounds = array<i64: 8, 1>}, {pipeline_mode = #tpu.pipeline_mode<synchronous>, transform_indices = @transform_6, window_bounds = array<i64: 9, 512>}, {transform_indices = @transform_7, window_bounds = array<i64: 1, 1>}, {transform_indices = @transform_8, window_bounds = array<i64: 8, 512>}]} {
    %c0 = arith.constant 0 : index
    %c0_0 = arith.constant 0 : index
    %0 = memref.load %arg8[%c0, %c0_0] : memref<1x1xf32, #tpu.memory_space<smem>>
    %c0_1 = arith.constant 0 : index
    %c0_2 = arith.constant 0 : index
    %1 = vector.load %arg1[%c0_1, %c0_2] : memref<8x512xf32, #tpu.memory_space<vmem>>, vector<8x512xf32>
    %c0_3 = arith.constant 0 : index
    %c0_4 = arith.constant 0 : index
    %2 = vector.load %arg2[%c0_3, %c0_4] : memref<8x8xf32, #tpu.memory_space<vmem>>, vector<8x8xf32>
    %cst = arith.constant dense<0.000000e+00> : vector<8x512xf32>
    %3 = tpu.matmul %2, %1, %cst {dimension_numbers = #tpu.dot_dimension_numbers<[1], [0], [0], [1], [0, 0, 1, 1], [], []>} : vector<8x8xf32>, vector<8x512xf32>, vector<8x512xf32> -> vector<8x512xf32>
    %c0_5 = arith.constant 0 : index
    %c0_6 = arith.constant 0 : index
    %4 = vector.load %arg5[%c0_5, %c0_6] : memref<8x1xf32, #tpu.memory_space<vmem>>, vector<8x1xf32>
    %5 = vector.broadcast %4 : vector<8x1xf32> to vector<8x512xf32>
    %6 = arith.addf %3, %5 : vector<8x512xf32>
    %cst_7 = arith.constant 0.000000e+00 : f32
    %7 = vector.broadcast %cst_7 : f32 to vector<8x512xf32>
    %8 = arith.cmpf ogt, %6, %7 : vector<8x512xf32>
    %9 = vector.broadcast %0 : f32 to vector<8x512xf32>
    %10 = arith.mulf %9, %6 : vector<8x512xf32>
    %11 = arith.select %8, %6, %10 : vector<8x512xi1>, vector<8x512xf32>
    %c17_i32 = arith.constant 17 : i32
    %12 = tpu.dynamic_rotate %11 by %c17_i32 dim 1 : vector<8x512xf32>, i32 -> vector<8x512xf32>
    %c0_8 = arith.constant 0 : index
    %c0_9 = arith.constant 0 : index
    %13 = vector.load %arg7[%c0_8, %c0_9] : memref<9x512xf32, #tpu.memory_space<vmem>>, vector<1x512xf32>
    %14 = vector.broadcast %13 : vector<1x512xf32> to vector<8x512xf32>
    %15 = arith.mulf %12, %14 : vector<8x512xf32>
    %c0_10 = arith.constant 0 : index
    %c0_11 = arith.constant 0 : index
    %16 = vector.load %arg10[%c0_10, %c0_11] : memref<72x512xf32, #tpu.memory_space<vmem>>, vector<8x512xf32>
    tpu.vector_store %arg10[%c0_10, %c0_11], %15 {strides = array<i32>} : memref<72x512xf32, #tpu.memory_space<vmem>>, vector<8x512xf32>,
    %c16_i32 = arith.constant 16 : i32
    %17 = tpu.dynamic_rotate %11 by %c16_i32 dim 1 : vector<8x512xf32>, i32 -> vector<8x512xf32>
    %c1 = arith.constant 1 : index
    %c0_12 = arith.constant 0 : index
    %18 = vector.load %arg7[%c1, %c0_12] : memref<9x512xf32, #tpu.memory_space<vmem>>, vector<1x512xf32>
    %19 = vector.broadcast %18 : vector<1x512xf32> to vector<8x512xf32>
    %20 = arith.mulf %17, %19 : vector<8x512xf32>
    %c8 = arith.constant 8 : index
    %c0_13 = arith.constant 0 : index
    %21 = vector.load %arg10[%c8, %c0_13] : memref<72x512xf32, #tpu.memory_space<vmem>>, vector<8x512xf32>
    tpu.vector_store %arg10[%c8, %c0_13], %20 {strides = array<i32>} : memref<72x512xf32, #tpu.memory_space<vmem>>, vector<8x512xf32>,
    %c15_i32 = arith.constant 15 : i32
    %22 = tpu.dynamic_rotate %11 by %c15_i32 dim 1 : vector<8x512xf32>, i32 -> vector<8x512xf32>
    %c2 = arith.constant 2 : index
    %c0_14 = arith.constant 0 : index
    %23 = vector.load %arg7[%c2, %c0_14] : memref<9x512xf32, #tpu.memory_space<vmem>>, vector<1x512xf32>
    %24 = vector.broadcast %23 : vector<1x512xf32> to vector<8x512xf32>
    %25 = arith.mulf %22, %24 : vector<8x512xf32>
    %c16 = arith.constant 16 : index
    %c0_15 = arith.constant 0 : index
    %26 = vector.load %arg10[%c16, %c0_15] : memref<72x512xf32, #tpu.memory_space<vmem>>, vector<8x512xf32>
    tpu.vector_store %arg10[%c16, %c0_15], %25 {strides = array<i32>} : memref<72x512xf32, #tpu.memory_space<vmem>>, vector<8x512xf32>,
    %c1_i32 = arith.constant 1 : i32
    %27 = tpu.dynamic_rotate %11 by %c1_i32 dim 1 : vector<8x512xf32>, i32 -> vector<8x512xf32>
    %c3 = arith.constant 3 : index
    %c0_16 = arith.constant 0 : index
    %28 = vector.load %arg7[%c3, %c0_16] : memref<9x512xf32, #tpu.memory_space<vmem>>, vector<1x512xf32>
    %29 = vector.broadcast %28 : vector<1x512xf32> to vector<8x512xf32>
    %30 = arith.mulf %27, %29 : vector<8x512xf32>
    %c24 = arith.constant 24 : index
    %c0_17 = arith.constant 0 : index
    %31 = vector.load %arg10[%c24, %c0_17] : memref<72x512xf32, #tpu.memory_space<vmem>>, vector<8x512xf32>
    tpu.vector_store %arg10[%c24, %c0_17], %30 {strides = array<i32>} : memref<72x512xf32, #tpu.memory_space<vmem>>, vector<8x512xf32>,
    %c32 = arith.constant 32 : index
    %c0_18 = arith.constant 0 : index
    %32 = vector.load %arg10[%c32, %c0_18] : memref<72x512xf32, #tpu.memory_space<vmem>>, vector<8x512xf32>
    tpu.vector_store %arg10[%c32, %c0_18], %11 {strides = array<i32>} : memref<72x512xf32, #tpu.memory_space<vmem>>, vector<8x512xf32>,
    %c511_i32 = arith.constant 511 : i32
    %33 = tpu.dynamic_rotate %11 by %c511_i32 dim 1 : vector<8x512xf32>, i32 -> vector<8x512xf32>
    %c5 = arith.constant 5 : index
    %c0_19 = arith.constant 0 : index
    %34 = vector.load %arg7[%c5, %c0_19] : memref<9x512xf32, #tpu.memory_space<vmem>>, vector<1x512xf32>
    %35 = vector.broadcast %34 : vector<1x512xf32> to vector<8x512xf32>
    %36 = arith.mulf %33, %35 : vector<8x512xf32>
    %c40 = arith.constant 40 : index
    %c0_20 = arith.constant 0 : index
    %37 = vector.load %arg10[%c40, %c0_20] : memref<72x512xf32, #tpu.memory_space<vmem>>, vector<8x512xf32>
    tpu.vector_store %arg10[%c40, %c0_20], %36 {strides = array<i32>} : memref<72x512xf32, #tpu.memory_space<vmem>>, vector<8x512xf32>,
    %c497_i32 = arith.constant 497 : i32
    %38 = tpu.dynamic_rotate %11 by %c497_i32 dim 1 : vector<8x512xf32>, i32 -> vector<8x512xf32>
    %c6 = arith.constant 6 : index
    %c0_21 = arith.constant 0 : index
    %39 = vector.load %arg7[%c6, %c0_21] : memref<9x512xf32, #tpu.memory_space<vmem>>, vector<1x512xf32>
    %40 = vector.broadcast %39 : vector<1x512xf32> to vector<8x512xf32>
    %41 = arith.mulf %38, %40 : vector<8x512xf32>
    %c48 = arith.constant 48 : index
    %c0_22 = arith.constant 0 : index
    %42 = vector.load %arg10[%c48, %c0_22] : memref<72x512xf32, #tpu.memory_space<vmem>>, vector<8x512xf32>
    tpu.vector_store %arg10[%c48, %c0_22], %41 {strides = array<i32>} : memref<72x512xf32, #tpu.memory_space<vmem>>, vector<8x512xf32>,
    %c496_i32 = arith.constant 496 : i32
    %43 = tpu.dynamic_rotate %11 by %c496_i32 dim 1 : vector<8x512xf32>, i32 -> vector<8x512xf32>
    %c7 = arith.constant 7 : index
    %c0_23 = arith.constant 0 : index
    %44 = vector.load %arg7[%c7, %c0_23] : memref<9x512xf32, #tpu.memory_space<vmem>>, vector<1x512xf32>
    %45 = vector.broadcast %44 : vector<1x512xf32> to vector<8x512xf32>
    %46 = arith.mulf %43, %45 : vector<8x512xf32>
    %c56 = arith.constant 56 : index
    %c0_24 = arith.constant 0 : index
    %47 = vector.load %arg10[%c56, %c0_24] : memref<72x512xf32, #tpu.memory_space<vmem>>, vector<8x512xf32>
    tpu.vector_store %arg10[%c56, %c0_24], %46 {strides = array<i32>} : memref<72x512xf32, #tpu.memory_space<vmem>>, vector<8x512xf32>,
    %c495_i32 = arith.constant 495 : i32
    %48 = tpu.dynamic_rotate %11 by %c495_i32 dim 1 : vector<8x512xf32>, i32 -> vector<8x512xf32>
    %c8_25 = arith.constant 8 : index
    %c0_26 = arith.constant 0 : index
    %49 = vector.load %arg7[%c8_25, %c0_26] : memref<9x512xf32, #tpu.memory_space<vmem>>, vector<1x512xf32>
    %50 = vector.broadcast %49 : vector<1x512xf32> to vector<8x512xf32>
    %51 = arith.mulf %48, %50 : vector<8x512xf32>
    %c64 = arith.constant 64 : index
    %c0_27 = arith.constant 0 : index
    %52 = vector.load %arg10[%c64, %c0_27] : memref<72x512xf32, #tpu.memory_space<vmem>>, vector<8x512xf32>
    tpu.vector_store %arg10[%c64, %c0_27], %51 {strides = array<i32>} : memref<72x512xf32, #tpu.memory_space<vmem>>, vector<8x512xf32>,
    %c0_28 = arith.constant 0 : index
    %c0_29 = arith.constant 0 : index
    %53 = vector.load %arg3[%c0_28, %c0_29] : memref<8x72xf32, #tpu.memory_space<vmem>>, vector<8x72xf32>
    %c0_30 = arith.constant 0 : index
    %c0_31 = arith.constant 0 : index
    %54 = vector.load %arg10[%c0_30, %c0_31] : memref<72x512xf32, #tpu.memory_space<vmem>>, vector<72x512xf32>
    %cst_32 = arith.constant dense<0.000000e+00> : vector<8x512xf32>
    %55 = tpu.matmul %53, %54, %cst_32 {dimension_numbers = #tpu.dot_dimension_numbers<[1], [0], [0], [1], [0, 0, 1, 1], [], []>} : vector<8x72xf32>, vector<72x512xf32>, vector<8x512xf32> -> vector<8x512xf32>
    %c0_33 = arith.constant 0 : index
    %c0_34 = arith.constant 0 : index
    %56 = vector.load %arg6[%c0_33, %c0_34] : memref<8x1xf32, #tpu.memory_space<vmem>>, vector<8x1xf32>
    %57 = vector.broadcast %56 : vector<8x1xf32> to vector<8x512xf32>
    %58 = arith.addf %55, %57 : vector<8x512xf32>
    %cst_35 = arith.constant 0.000000e+00 : f32
    %59 = vector.broadcast %cst_35 : f32 to vector<8x512xf32>
    %60 = arith.cmpf ogt, %58, %59 : vector<8x512xf32>
    %61 = vector.broadcast %0 : f32 to vector<8x512xf32>
    %62 = arith.mulf %61, %58 : vector<8x512xf32>
    %63 = arith.select %60, %58, %62 : vector<8x512xi1>, vector<8x512xf32>
    %c0_36 = arith.constant 0 : index
    %c0_37 = arith.constant 0 : index
    %64 = vector.load %arg4[%c0_36, %c0_37] : memref<8x8xf32, #tpu.memory_space<vmem>>, vector<8x8xf32>
    %cst_38 = arith.constant dense<0.000000e+00> : vector<8x512xf32>
    %65 = tpu.matmul %64, %63, %cst_38 {dimension_numbers = #tpu.dot_dimension_numbers<[1], [0], [0], [1], [0, 0, 1, 1], [], []>} : vector<8x8xf32>, vector<8x512xf32>, vector<8x512xf32> -> vector<8x512xf32>
    %66 = arith.addf %65, %1 : vector<8x512xf32>
    %cst_39 = arith.constant 0.000000e+00 : f32
    %67 = vector.broadcast %cst_39 : f32 to vector<8x512xf32>
    %68 = arith.cmpf ogt, %66, %67 : vector<8x512xf32>
    %69 = vector.broadcast %0 : f32 to vector<8x512xf32>
    %70 = arith.mulf %69, %66 : vector<8x512xf32>
    %71 = arith.select %68, %66, %70 : vector<8x512xi1>, vector<8x512xf32>
    %c0_40 = arith.constant 0 : index
    %c0_41 = arith.constant 0 : index
    %72 = vector.load %arg9[%c0_40, %c0_41] : memref<8x512xf32, #tpu.memory_space<vmem>>, vector<8x512xf32>
    tpu.vector_store %arg9[%c0_40, %c0_41], %71 {strides = array<i32>} : memref<8x512xf32, #tpu.memory_space<vmem>>, vector<8x512xf32>,
    return
  }
  func.func @transform_0(%arg0: i32) -> (i32, i32) {
    %c0_i32 = arith.constant 0 : i32
    %c0_i32_0 = arith.constant 0 : i32
    return %c0_i32, %arg0 : i32, i32
  }
  func.func @transform_1(%arg0: i32) -> (i32, i32) {
    %c0_i32 = arith.constant 0 : i32
    %c0_i32_0 = arith.constant 0 : i32
    %c0_i32_1 = arith.constant 0 : i32
    return %c0_i32, %c0_i32_0 : i32, i32
  }
  func.func @transform_2(%arg0: i32) -> (i32, i32) {
    %c0_i32 = arith.constant 0 : i32
    %c0_i32_0 = arith.constant 0 : i32
    %c0_i32_1 = arith.constant 0 : i32
    return %c0_i32, %c0_i32_0 : i32, i32
  }
  func.func @transform_3(%arg0: i32) -> (i32, i32) {
    %c0_i32 = arith.constant 0 : i32
    %c0_i32_0 = arith.constant 0 : i32
    %c0_i32_1 = arith.constant 0 : i32
    return %c0_i32, %c0_i32_0 : i32, i32
  }
  func.func @transform_4(%arg0: i32) -> (i32, i32) {
    %c0_i32 = arith.constant 0 : i32
    %c0_i32_0 = arith.constant 0 : i32
    %c0_i32_1 = arith.constant 0 : i32
    return %c0_i32, %c0_i32_0 : i32, i32
  }
  func.func @transform_5(%arg0: i32) -> (i32, i32) {
    %c0_i32 = arith.constant 0 : i32
    %c0_i32_0 = arith.constant 0 : i32
    %c0_i32_1 = arith.constant 0 : i32
    return %c0_i32, %c0_i32_0 : i32, i32
  }
  func.func @transform_6(%arg0: i32) -> (i32, i32) {
    %c0_i32 = arith.constant 0 : i32
    %c0_i32_0 = arith.constant 0 : i32
    %c0_i32_1 = arith.constant 0 : i32
    return %c0_i32, %c0_i32_0 : i32, i32
  }
  func.func @transform_7(%arg0: i32) -> (i32, i32) {
    %c0_i32 = arith.constant 0 : i32
    %c0_i32_0 = arith.constant 0 : i32
    %c0_i32_1 = arith.constant 0 : i32
    return %c0_i32, %c0_i32_0 : i32, i32
  }
  func.func @transform_8(%arg0: i32) -> (i32, i32) {
    %c0_i32 = arith.constant 0 : i32
    %c0_i32_0 = arith.constant 0 : i32
    return %c0_i32, %arg0 : i32, i32
  }
}

</mosaic_0001>

<bundles_post_ra>
// kernel: tpu_custom_call.1
= control target key start
LH: loop header
LB: loop body
LE: loop exit
PB: predicated region body
PF: predicated region fallthrough
CT: control target
= control target key end

     0   :  { %14 = vsyncpa [#allocation5], 0  ;;  %s1448_s0 = inlined_call_operand.hbm [shape: f32[8,512], index: 0, kind: input, shape index: {}]   ;;  %s1449_s1 = inlined_call_operand.vmem [shape: f32[8,8], index: 1, kind: input, shape index: {}]   ;;  %s1450_s2 = inlined_call_operand.vmem [shape: f32[8,72], index: 2, kind: input, shape index: {}]   ;;  %s1451_s3 = inlined_call_operand.vmem [shape: f32[8,8], index: 3, kind: input, shape index: {}]   ;;  %s1452_s4 = inlined_call_operand.vmem [shape: f32[8,1], index: 4, kind: input, shape index: {}]   ;;  %s1453_s5 = inlined_call_operand.vmem [shape: f32[8,1], index: 5, kind: input, shape index: {}]   ;;  %s1454_s6 = inlined_call_operand.hbm [shape: f32[9,512], index: 6, kind: input, shape index: {}]   ;;  %s1455_s7 = inlined_call_operand.<no memory space> [shape: f32[1,1], index: 7, kind: input, shape index: {}]   ;;  %s1456_s8 = inlined_call_operand.hbm [shape: f32[8,512], index: 8, kind: output, shape index: {}]  }
   0x1   :  { %15 = vsyncpa [#allocation8], 0 }
   0x2   :  { %16 = vsyncpa [#allocation6], 0  ;;  %s1053_s27 = smov [#allocation4]   ;;  %s1054_s29 = smov [#allocation7]  }
   0x3   :  { %s23_s28 = sshll.u32 %s1053_s27, 4  ;;  %s42_s30 = sshll.u32 %s1054_s29, 4  ;;  %s24_s28 = int_to_ptr.vmem [resolvable:$true] %s23_s28  ;;  %s43_s30 = int_to_ptr.vmem [resolvable:$true] %s42_s30 }
   0x4   :  { %s995_s9 = scalar_lea.vmem %s24_s28, 512  ;;  %p1000_p1 = scmp.lt.s32.totalorder %s24_s28, %s24_s28 }
   0x5   :  { %p996_p0 = scmp.ne.s32.totalorder %s24_s28, %s995_s9  ;;  %p1001_p2 = scmp.lt.s32.totalorder %s995_s9, %s995_s9 }
   0x7   :  { %p1002_p3 = por %p1001_p2, %p1000_p1 }
   0x9   :  { %p1003_p4 = pnand %p1002_p3, %p996_p0 }
   0xb   :  { %1006 = shalt.err (!%p1003_p4)
}
   0xc   :  { %26 = dma.hbm_to_vmem [thread:$0]  %s1448_s0, 512, %s24_s28, [#allocation5]  }
   0xd   :  { %s1015_s12 = scalar_lea.vmem %s43_s30, 1024  ;;  %p1020_p6 = scmp.lt.s32.totalorder %s43_s30, %s43_s30 }
   0xe   :  { %p1016_p5 = scmp.ne.s32.totalorder %s43_s30, %s1015_s12  ;;  %p1021_p7 = scmp.lt.s32.totalorder %s1015_s12, %s1015_s12 }
  0x10   :  { %p1022_p8 = por %p1021_p7, %p1020_p6 }
  0x12   :  { %p1023_p9 = pnand %p1022_p8, %p1016_p5 }
  0x14   :  { %1026 = shalt.err (!%p1023_p9)
}
  0x15   :  { %s1055_s13 = smov 512   ;;  %s1056_s14 = smov 32  }
  0x16   :  { %48 = dma.hbm_to_vmem [thread:$0]  %s1454_s6, 1024, %s43_s30, [#allocation8], %s1055_s13, %s1055_s13, %s1056_s14  }
  0x17   :  { %1047 = dma.done.wait [#allocation5], 512  }
  0x18   :  { %1048 = vsyncadd [#allocation5], 4294966784 }
  0x19   :  { %1049 = dma.done.wait [#allocation8], 1024  }
  0x1a   :  { %1050 = vsyncadd [#allocation8], 4294966272  ;;  %v1057_v0 = vmov 0.0   ;;  %v1058_v1 = vmov 0   ;;  %v1121_v2 = vld [vmem:[#allocation4 + $0x8] sm:$0xff]  ;;  %v1123_v3 = vld [vmem:[#allocation4 + $0x18] sm:$0xff]  ;;  %v1146_v10 = vstv %s1455_s7  ;;  %v236_v27 = vlaneseq }
  0x1b   :  { %137 = vmatprep.mubr.f32.mxu0 %v1057_v0  ;;  %208 = vmatprep.mubr.f32.mxu1 %v1057_v0  ;;  %v1125_v4 = vld [vmem:[#allocation4] sm:$0xff]  ;;  %vm69_vm0 = vcmask 64512   ;;  %v1129_v5 = vld [vmem:[#allocation4 + $0x10] sm:$0xff]  ;;  %s1060_s7 = smov 112   ;;  %s1061_s20 = smov 113   ;;  %vm628_vm13 = vcmask 588800  }
  0x1c   :  { %985 = vset.pattern.permute.xlu0 %v1058_v1  ;;  %986 = vset.pattern.permute.xlu1 %v1058_v1  ;;  %v62_v6 = vld [vmem:[%s1449_s1] sm:$0xff]  ;;  %s1062_s21 = smov 127   ;;  %s1063_s22 = smov 1   ;;  %v1199_v28 = vshrl.u32 %v236_v27, 7  ;;  %v1201_v29 = vand.u32 127, %v236_v27 }
  0x1d   :  { %103 = vmatprep.subr.mxu0 %v1121_v2  ;;  %174 = vmatprep.subr.mxu1 %v1123_v3  ;;  %v63_v7 = vld [vmem:[%s1452_s4] sm:$0xff]  ;;  %s1059_s4 = smov 111   ;;  %s1064_s23 = smov 15  }
  0x1e   :  { %104 = vmatpush1.msra.mxu0 %v1125_v4  ;;  %175 = vmatpush1.msra.mxu1 %v1129_v5  ;;  %s1065_s24 = smov 16   ;;  %s1066_s25 = smov 17   ;;  %v622_v26 = vld [vmem:[%s1453_s5] sm:$0xff]  ;;  %v1204_v30 = vsub.s32 2, %v1199_v28  ;;  %v1207_v31 = vsub.s32 3, %v1199_v28  ;;  %vm549_vm5 = vcmp.lt.s32.totalorder %v1201_v29, 111 }
  0x1f   :  { %964 = vmatmul.mubr.msk.f32.vlgmr.msra.gmra.mxu0 %vm69_vm0, %v62_v6  ;;  %965 = vmatmul.mubr.msk.f32.vlgmr.msra.gmra.mxu1 %vm69_vm0, %v62_v6  ;;  %v1209_v32 = vld [vmem:[#allocation7 + $0x20] ss:$8 sm:$0xf]  ;;  %v1232_v45 = vld [vmem:[#allocation7 + $0x7] ss:$8 sm:$0xf] }
  0x20   :  { %66 = vperm.xlu0 %985, %v63_v7   ;;  %696 = vmatprep.mubr.f32.mxu0 %v1057_v0  ;;  %v568_v35 = vrot.slane %v1209_v32, %v1204_v30  ;;  %v572_v36 = vrot.slane %v1209_v32, %v1207_v31  ;;  %v524_v46 = vrot.slane %v1232_v45, %v1204_v30  ;;  %vm505_vm6 = vcmp.lt.s32.totalorder %v1201_v29, 112  ;;  %v1251_v56 = vld [vmem:[#allocation7 + $0x6] ss:$8 sm:$0xf] }
  0x21   :  { %767 = vmatprep.mubr.f32.mxu1 %v1057_v0  ;;  %v528_v47 = vrot.slane %v1232_v45, %v1207_v31  ;;  %v480_v57 = vrot.slane %v1251_v56, %v1204_v30  ;;  %v484_v58 = vrot.slane %v1251_v56, %v1207_v31  ;;  %vm461_vm7 = vcmp.lt.s32.totalorder %v1201_v29, 113 }
  0x22   :  { %vm417_vm8 = vcmp.lt.s32.totalorder %v1201_v29, 127  ;;  %vm369_vm9 = vcmp.lt.s32.totalorder %v1201_v29, 1  ;;  %vm325_vm10 = vcmp.lt.s32.totalorder %v1201_v29, 15  ;;  %vm281_vm11 = vcmp.lt.s32.totalorder %v1201_v29, 16 }
  0x23   :  { %vm238_vm12 = vcmp.lt.s32.totalorder %v1201_v29, 17 }
  0x9b   :  { %v67_v8 = vpop.permute.xlu0 %66 }
  0xdf   :  { %v139_v9 = vpop.f32.mrf.mxu0  ;;  %v210_v11 = vpop.f32.mrf.mxu1 }
  0xe0   :  { %v140_v12 = vadd.f32 %v139_v9, %v67_v8  ;;  %v211_v13 = vadd.f32 %v210_v11, %v67_v8 }
  0xe1   :  { %v141_v14 = vpop.f32.mrf.mxu0  ;;  %v212_v15 = vpop.f32.mrf.mxu1 }
  0xe2   :  { %vm215_vm1 = vcmp.gt.f32.partialorder %v140_v12, 0.0  ;;  %v220_v16 = vmul.f32 %v1146_v10, %v140_v12  ;;  %vm217_vm2 = vcmp.gt.f32.partialorder %v211_v13, 0.0  ;;  %v222_v17 = vmul.f32 %v1146_v10, %v211_v13 }
  0xe3   :  { %v213_v18 = vadd.f32 %v212_v15, %v67_v8  ;;  %v142_v21 = vadd.f32 %v141_v14, %v67_v8  ;;  %v1270_v8 = vld [vmem:[#allocation7 + $0x5] ss:$8 sm:$0xf] }
  0xe4   :  { %v1150_v19 = vsel %vm215_vm1, %v140_v12, %v220_v16  ;;  %v1152_v20 = vsel %vm217_vm2, %v211_v13, %v222_v17  ;;  %v436_v9 = vrot.slane %v1270_v8, %v1204_v30  ;;  %v440_v11 = vrot.slane %v1270_v8, %v1207_v31 }
  0xe5   :  { %vm218_vm3 = vcmp.gt.f32.partialorder %v213_v18, 0.0  ;;  %v223_v22 = vmul.f32 %v1146_v10, %v213_v18  ;;  %545 = vrot.lane.b32.xlu1 %v1152_v20, %s1059_s4  ;;  %541 = vrot.lane.b32.xlu0 %v1150_v19, %s1059_s4  ;;  %v221_v23 = vmul.f32 %v1146_v10, %v142_v21  ;;  %vm216_vm4 = vcmp.gt.f32.partialorder %v142_v21, 0.0 }
  0xe7   :  { %v1160_v24 = vsel %vm218_vm3, %v213_v18, %v223_v22  ;;  %v1165_v25 = vsel %vm216_vm4, %v142_v21, %v221_v23  ;;  %v1285_v21 = vld [vmem:[#allocation7 + $0x3] ss:$8 sm:$0xf] }
  0xe8   :  { %v392_v23 = vrot.slane %v1285_v21, %v1207_v31 }
  0xe9   :  { %497 = vrot.lane.b32.xlu1 %v1150_v19, %s1060_s7  ;;  %547 = vrot.lane.b32.xlu0 %v1160_v24, %s1059_s4 }
  0xed   :  { %501 = vrot.lane.b32.xlu1 %v1152_v20, %s1060_s7  ;;  %499 = vrot.lane.b32.xlu0 %v1165_v25, %s1060_s7 }
  0xf1   :  { %453 = vrot.lane.b32.xlu1 %v1150_v19, %s1061_s20  ;;  %503 = vrot.lane.b32.xlu0 %v1160_v24, %s1060_s7 }
  0xf5   :  { %457 = vrot.lane.b32.xlu1 %v1152_v20, %s1061_s20  ;;  %455 = vrot.lane.b32.xlu0 %v1165_v25, %s1061_s20 }
  0xf9   :  { %409 = vrot.lane.b32.xlu1 %v1150_v19, %s1062_s21  ;;  %459 = vrot.lane.b32.xlu0 %v1160_v24, %s1061_s20 }
  0xfd   :  { %413 = vrot.lane.b32.xlu1 %v1152_v20, %s1062_s21  ;;  %411 = vrot.lane.b32.xlu0 %v1165_v25, %s1062_s21 }
 0x101   :  { %361 = vrot.lane.b32.xlu1 %v1150_v19, %s1063_s22  ;;  %415 = vrot.lane.b32.xlu0 %v1160_v24, %s1062_s21 }
 0x105   :  { %365 = vrot.lane.b32.xlu1 %v1152_v20, %s1063_s22  ;;  %363 = vrot.lane.b32.xlu0 %v1165_v25, %s1063_s22 }
 0x109   :  { %317 = vrot.lane.b32.xlu1 %v1150_v19, %s1064_s23  ;;  %367 = vrot.lane.b32.xlu0 %v1160_v24, %s1063_s22 }
 0x10d   :  { %321 = vrot.lane.b32.xlu1 %v1152_v20, %s1064_s23  ;;  %319 = vrot.lane.b32.xlu0 %v1165_v25, %s1064_s23 }
 0x111   :  { %543 = vrot.lane.b32.xlu1 %v1165_v25, %s1059_s4  ;;  %323 = vrot.lane.b32.xlu0 %v1160_v24, %s1064_s23 }
 0x115   :  { %273 = vrot.lane.b32.xlu1 %v1150_v19, %s1065_s24  ;;  %275 = vrot.lane.b32.xlu0 %v1165_v25, %s1065_s24 }
 0x119   :  { %277 = vrot.lane.b32.xlu1 %v1152_v20, %s1065_s24  ;;  %279 = vrot.lane.b32.xlu0 %v1160_v24, %s1065_s24 }
 0x11d   :  { %228 = vrot.lane.b32.xlu1 %v1150_v19, %s1066_s25  ;;  %230 = vrot.lane.b32.xlu0 %v1165_v25, %s1066_s25 }
 0x121   :  { %232 = vrot.lane.b32.xlu1 %v1152_v20, %s1066_s25  ;;  %234 = vrot.lane.b32.xlu0 %v1160_v24, %s1066_s25 }
 0x125   :  { %625 = vperm.xlu1 %986, %v622_v26   ;;  %v388_v26 = vrot.slane %v1285_v21, %v1204_v30 }
 0x157   :  { %v1211_v33 = vpop.permute.xlu1 %545  ;;  %v1213_v34 = vpop.permute.xlu0 %541 }
 0x15b   :  { %v1220_v37 = vpop.permute.xlu1 %497  ;;  %v548_v38 = vpop.permute.xlu0 %547 }
 0x15c   :  { %v550_v39 = vsel %vm549_vm5, %v1211_v33, %v548_v38  ;;  %v553_v40 = vsel %vm549_vm5, %v548_v38, %v1213_v34 }
 0x15d   :  { %v579_v41 = vmul.f32 %v568_v35, %v550_v39  ;;  %v580_v42 = vmul.f32 %v572_v36, %v553_v40  ;;  %v1307_v40 = vsub.s32 0, %v1199_v28 }
 0x15f   :  { %v1228_v43 = vpop.permute.xlu1 %501  ;;  %717 = vmatprep.subr.mxu1 %v580_v42  ;;  %v1230_v44 = vpop.permute.xlu0 %499  ;;  %v1312_v42 = vld [vmem:[#allocation7 + $0x2] ss:$8 sm:$0xf] }
 0x160   :  { %718 = vmatpush1.msra.mxu1 %v579_v41  ;;  %v1310_v41 = vsub.s32 1, %v1199_v28  ;;  %v344_v28 = vrot.slane %v1312_v42, %v1204_v30 }
 0x163   :  { %v1239_v48 = vpop.permute.xlu1 %453  ;;  %v504_v49 = vpop.permute.xlu0 %503 }
 0x164   :  { %v506_v50 = vsel %vm505_vm6, %v1228_v43, %v504_v49  ;;  %v509_v51 = vsel %vm505_vm6, %v504_v49, %v1220_v37  ;;  %v564_v49 = vrot.slane %v1209_v32, %v1310_v41 }
 0x165   :  { %v535_v52 = vmul.f32 %v524_v46, %v506_v50  ;;  %v536_v53 = vmul.f32 %v528_v47, %v509_v51  ;;  %v560_v47 = vrot.slane %v1209_v32, %v1307_v40  ;;  %v348_v50 = vrot.slane %v1312_v42, %v1207_v31 }
 0x166   :  { %v516_v51 = vrot.slane %v1232_v45, %v1307_v40 }
 0x167   :  { %v1247_v54 = vpop.permute.xlu1 %457  ;;  %719 = vmatprep.subr.mxu1 %v536_v53  ;;  %v1249_v55 = vpop.permute.xlu0 %455  ;;  %v476_v53 = vrot.slane %v1251_v56, %v1310_v41 }
 0x168   :  { %720 = vmatpush1.msra.mxu1 %v535_v52  ;;  %v520_v52 = vrot.slane %v1232_v45, %v1310_v41 }
 0x16b   :  { %v1258_v59 = vpop.permute.xlu1 %409  ;;  %v460_v60 = vpop.permute.xlu0 %459 }
 0x16c   :  { %v462_v61 = vsel %vm461_vm7, %v1247_v54, %v460_v60  ;;  %v465_v62 = vsel %vm461_vm7, %v460_v60, %v1239_v48  ;;  %v507_v60 = vsel %vm505_vm6, %v1230_v44, %v1228_v43  ;;  %v472_v43 = vrot.slane %v1251_v56, %v1307_v40 }
 0x16d   :  { %v491_v63 = vmul.f32 %v480_v57, %v462_v61  ;;  %v492_v1 = vmul.f32 %v484_v58, %v465_v62 }
 0x16f   :  { %v1266_v6 = vpop.permute.xlu1 %413  ;;  %721 = vmatprep.subr.mxu1 %v492_v1  ;;  %v1268_v7 = vpop.permute.xlu0 %411 }
 0x170   :  { %722 = vmatpush1.msra.mxu1 %v491_v63  ;;  %v508_v63 = vsel %vm505_vm6, %v1220_v37, %v1230_v44  ;;  %v432_v37 = vrot.slane %v1270_v8, %v1310_v41 }
 0x171   :  { %v533_v56 = vmul.f32 %v516_v51, %v508_v63  ;;  %v336_v51 = vrot.slane %v1312_v42, %v1307_v40 }
 0x173   :  { %v1277_v12 = vpop.permute.xlu1 %361  ;;  %v416_v13 = vpop.permute.xlu0 %415 }
 0x174   :  { %v418_v14 = vsel %vm417_vm8, %v1266_v6, %v416_v13  ;;  %v421_v15 = vsel %vm417_vm8, %v416_v13, %v1258_v59  ;;  %v534_v13 = vmul.f32 %v520_v52, %v507_v60 }
 0x175   :  { %v447_v16 = vmul.f32 %v436_v9, %v418_v14  ;;  %v448_v17 = vmul.f32 %v440_v11, %v421_v15  ;;  %v464_v14 = vsel %vm461_vm7, %v1239_v48, %v1249_v55 }
 0x177   :  { %v366_v18 = vpop.permute.xlu1 %365  ;;  %723 = vmatprep.subr.mxu1 %v448_v17  ;;  %v1287_v22 = vpop.permute.xlu0 %363  ;;  %v287_v17 = vld [vmem:[#allocation7 + $0x1] ss:$8 sm:$0xf] }
 0x178   :  { %724 = vmatpush1.msra.mxu1 %v447_v16  ;;  %v371_v27 = vsel %vm369_vm9, %v1287_v22, %v366_v18  ;;  %v428_v16 = vrot.slane %v1270_v8, %v1307_v40  ;;  %v489_v8 = vmul.f32 %v472_v43, %v464_v14  ;;  %v296_v52 = vrot.slane %v287_v17, %v1310_v41 }
 0x179   :  { %725 = vmatprep.subr.mxu1 %v1160_v24  ;;  %v399_v39 = vmul.f32 %v388_v26, %v371_v27  ;;  %v380_v27 = vrot.slane %v1285_v21, %v1307_v40 }
 0x17a   :  { %726 = vmatpush1.msra.mxu1 %v1152_v20 }
 0x17b   :  { %v1299_v35 = vpop.permute.xlu1 %317  ;;  %v1301_v36 = vpop.permute.xlu0 %367 }
 0x17c   :  { %v370_v24 = vsel %vm369_vm9, %v366_v18, %v1301_v36  ;;  %v300_v18 = vrot.slane %v287_v17, %v1204_v30 }
 0x17d   :  { %v400_v38 = vmul.f32 %v392_v23, %v370_v24  ;;  %v304_v23 = vrot.slane %v287_v17, %v1207_v31 }
 0x17f   :  { %v322_v20 = vpop.permute.xlu1 %321  ;;  %727 = vmatprep.subr.mxu1 %v400_v38  ;;  %v1314_v46 = vpop.permute.xlu0 %319 }
 0x180   :  { %728 = vmatpush1.msra.mxu1 %v399_v39  ;;  %v327_v57 = vsel %vm325_vm10, %v1314_v46, %v322_v20 }
 0x183   :  { %v544_v32 = vpop.permute.xlu1 %543  ;;  %v324_v58 = vpop.permute.xlu0 %323 }
 0x184   :  { %v551_v61 = vsel %vm549_vm5, %v544_v32, %v1211_v33  ;;  %v552_v45 = vsel %vm549_vm5, %v1213_v34, %v544_v32  ;;  %v326_v62 = vsel %vm325_vm10, %v322_v20, %v324_v58  ;;  %v463_v33 = vsel %vm461_vm7, %v1249_v55, %v1247_v54 }
 0x185   :  { %v577_v1 = vmul.f32 %v560_v47, %v552_v45  ;;  %v578_v9 = vmul.f32 %v564_v49, %v551_v61  ;;  %v356_v11 = vmul.f32 %v348_v50, %v326_v62  ;;  %v355_v34 = vmul.f32 %v344_v28, %v327_v57  ;;  %v243_v47 = vld [vmem:[#allocation7] ss:$8 sm:$0xf] }
 0x186   :  { %v419_v54 = vsel %vm417_vm8, %v1268_v7, %v1266_v6  ;;  %v490_v48 = vmul.f32 %v476_v53, %v463_v33  ;;  %v420_v55 = vsel %vm417_vm8, %v1258_v59, %v1268_v7  ;;  %v384_v6 = vrot.slane %v1285_v21, %v1310_v41 }
 0x187   :  { %646 = vmatprep.subr.mxu0 %v578_v9  ;;  %v274_v44 = vpop.permute.xlu1 %273  ;;  %729 = vmatprep.subr.mxu1 %v356_v11  ;;  %v276_v15 = vpop.permute.xlu0 %275  ;;  %v446_v26 = vmul.f32 %v432_v37, %v419_v54  ;;  %v445_v59 = vmul.f32 %v428_v16, %v420_v55  ;;  %v372_v7 = vsel %vm369_vm9, %v1277_v12, %v1287_v22 }
 0x188   :  { %647 = vmatpush1.msra.mxu0 %v577_v1  ;;  %730 = vmatpush1.msra.mxu1 %v355_v34  ;;  %v373_v21 = vsel %vm369_vm9, %v1301_v36, %v1277_v12  ;;  %v340_v49 = vrot.slane %v1312_v42, %v1310_v41  ;;  %v328_v22 = vsel %vm325_vm10, %v1299_v35, %v1314_v46 }
 0x189   :  { %648 = vmatprep.subr.mxu0 %v534_v13  ;;  %v292_v53 = vrot.slane %v287_v17, %v1307_v40  ;;  %v398_v12 = vmul.f32 %v384_v6, %v372_v7  ;;  %v329_v36 = vsel %vm325_vm10, %v324_v58, %v1299_v35  ;;  %v252_v46 = vrot.slane %v243_v47, %v1310_v41  ;;  %v585_v13 = vld [vmem:[%s1450_s2] sm:$0xff] }
 0x18a   :  { %649 = vmatpush1.msra.mxu0 %v533_v56  ;;  %v397_v42 = vmul.f32 %v380_v27, %v373_v21  ;;  %v284_v60 = vsel %vm281_vm11, %v274_v44, %v276_v15  ;;  %v256_v61 = vrot.slane %v243_v47, %v1204_v30  ;;  %v354_v45 = vmul.f32 %v340_v49, %v328_v22 }
 0x18b   :  { %v278_v24 = vpop.permute.xlu1 %277  ;;  %650 = vmatprep.subr.mxu0 %v490_v48  ;;  %v280_v38 = vpop.permute.xlu0 %279  ;;  %v260_v58 = vrot.slane %v243_v47, %v1207_v31  ;;  %v353_v41 = vmul.f32 %v336_v51, %v329_v36  ;;  %v310_v63 = vmul.f32 %v296_v52, %v284_v60 }
 0x18c   :  { %v283_v39 = vsel %vm281_vm11, %v276_v15, %v278_v24  ;;  %v282_v20 = vsel %vm281_vm11, %v278_v24, %v280_v38  ;;  %651 = vmatpush1.msra.mxu0 %v489_v8  ;;  %v285_v35 = vsel %vm281_vm11, %v280_v38, %v274_v44 }
 0x18d   :  { %v311_v50 = vmul.f32 %v300_v18, %v283_v39  ;;  %v312_v28 = vmul.f32 %v304_v23, %v282_v20  ;;  %652 = vmatprep.subr.mxu0 %v446_v26  ;;  %v309_v9 = vmul.f32 %v292_v53, %v285_v35  ;;  %v786_v26 = vld [vmem:[%s1451_s3] sm:$0xff]  ;;  %s1067_s3 = smov [#allocation9]  }
 0x18e   :  { %653 = vmatpush1.msra.mxu0 %v445_v59  ;;  %s954_s30 = sshll.u32 %s1067_s3, 4  ;;  %s955_s30 = int_to_ptr.vmem [resolvable:$true] %s954_s30 }
 0x18f   :  { %v229_v57 = vpop.permute.xlu1 %228  ;;  %654 = vmatprep.subr.mxu0 %v1165_v25  ;;  %731 = vmatprep.subr.mxu1 %v312_v28  ;;  %v231_v32 = vpop.permute.xlu0 %230  ;;  %v248_v25 = vrot.slane %v243_v47, %v1307_v40  ;;  %s1027_s9 = scalar_lea.vmem %s955_s30, 512  ;;  %p1032_p11 = scmp.lt.s32.totalorder %s955_s30, %s955_s30 }
 0x190   :  { %655 = vmatpush1.msra.mxu0 %v1150_v19  ;;  %732 = vmatpush1.msra.mxu1 %v311_v50  ;;  %v241_v62 = vsel %vm238_vm12, %v229_v57, %v231_v32  ;;  %p1028_p10 = scmp.ne.s32.totalorder %s955_s30, %s1027_s9  ;;  %p1033_p12 = scmp.lt.s32.totalorder %s1027_s9, %s1027_s9 }
 0x191   :  { %656 = vmatprep.subr.mxu0 %v398_v12  ;;  %v266_v31 = vmul.f32 %v252_v46, %v241_v62 }
 0x192   :  { %657 = vmatpush1.msra.mxu0 %v397_v42  ;;  %p1034_p13 = por %p1033_p12, %p1032_p11 }
 0x193   :  { %v233_v1 = vpop.permute.xlu1 %232  ;;  %658 = vmatprep.subr.mxu0 %v354_v45  ;;  %v235_v19 = vpop.permute.xlu0 %234 }
 0x194   :  { %v240_v30 = vsel %vm238_vm12, %v231_v32, %v233_v1  ;;  %v239_v11 = vsel %vm238_vm12, %v233_v1, %v235_v19  ;;  %v242_v40 = vsel %vm238_vm12, %v235_v19, %v229_v57  ;;  %659 = vmatpush1.msra.mxu0 %v353_v41  ;;  %p1035_p0 = pnand %p1034_p13, %p1028_p10 }
 0x195   :  { %v267_v43 = vmul.f32 %v256_v61, %v240_v30  ;;  %v265_v33 = vmul.f32 %v248_v25, %v242_v40  ;;  %v268_v34 = vmul.f32 %v260_v58, %v239_v11  ;;  %660 = vmatprep.subr.mxu0 %v310_v63 }
 0x196   :  { %661 = vmatpush1.msra.mxu0 %v309_v9 }
 0x197   :  { %662 = vmatprep.subr.mxu0 %v266_v31  ;;  %733 = vmatprep.subr.mxu1 %v268_v34 }
 0x198   :  { %663 = vmatpush1.msra.mxu0 %v265_v33  ;;  %734 = vmatpush1.msra.mxu1 %v267_v43 }
 0x199   :  { %966 = vmatmul.mubr.msk.f32.vlgmr.msra.gmra.mxu0 %vm628_vm13, %v585_v13  ;;  %967 = vmatmul.mubr.msk.f32.vlgmr.msra.gmra.mxu1 %vm628_vm13, %v585_v13 }
 0x19a   :  { %854 = vmatprep.mubr.f32.mxu0 %v1057_v0  ;;  %925 = vmatprep.mubr.f32.mxu1 %v1057_v0 }
 0x1a0   :  { %v626_v29 = vpop.permute.xlu1 %625 }
 0x259   :  { %v698_v14 = vpop.f32.mrf.mxu0  ;;  %v769_v37 = vpop.f32.mrf.mxu1 }
 0x25a   :  { %v699_v44 = vadd.f32 %v698_v14, %v626_v29  ;;  %v770_v15 = vadd.f32 %v769_v37, %v626_v29 }
 0x25b   :  { %v700_v56 = vpop.f32.mrf.mxu0  ;;  %v771_v16 = vpop.f32.mrf.mxu1 }
 0x25c   :  { %v701_v54 = vadd.f32 %v700_v56, %v626_v29  ;;  %v772_v17 = vadd.f32 %v771_v16, %v626_v29  ;;  %vm774_vm14 = vcmp.gt.f32.partialorder %v699_v44, 0.0  ;;  %v778_v48 = vmul.f32 %v699_v44, %v1146_v10 }
 0x25d   :  { %vm776_vm15 = vcmp.gt.f32.partialorder %v770_v15, 0.0  ;;  %v780_v55 = vmul.f32 %v770_v15, %v1146_v10 }
 0x25e   :  { %v779_v18 = vmul.f32 %v701_v54, %v1146_v10  ;;  %v781_v23 = vmul.f32 %v772_v17, %v1146_v10  ;;  %vm775_vm1 = vcmp.gt.f32.partialorder %v701_v54, 0.0  ;;  %vm777_vm2 = vcmp.gt.f32.partialorder %v772_v17, 0.0 }
 0x25f   :  { %v782_v6 = vsel %vm774_vm14, %v699_v44, %v778_v48  ;;  %v784_v27 = vsel %vm776_vm15, %v770_v15, %v780_v55 }
 0x260   :  { %v783_v0 = vsel %vm775_vm1, %v701_v54, %v779_v18  ;;  %v785_v8 = vsel %vm777_vm2, %v772_v17, %v781_v23 }
 0x261   :  { %820 = vmatprep.subr.mxu0 %v783_v0  ;;  %891 = vmatprep.subr.mxu1 %v785_v8 }
 0x262   :  { %821 = vmatpush1.msra.mxu0 %v782_v6  ;;  %892 = vmatpush1.msra.mxu1 %v784_v27 }
 0x263   :  { %968 = vmatmul.mubr.msk.f32.vlgmr.msra.gmra.mxu0 %vm69_vm0, %v786_v26  ;;  %969 = vmatmul.mubr.msk.f32.vlgmr.msra.gmra.mxu1 %vm69_vm0, %v786_v26 }
 0x323   :  { %v856_v24 = vpop.f32.mrf.mxu0  ;;  %v927_v38 = vpop.f32.mrf.mxu1 }
 0x324   :  { %v857_v59 = vadd.f32 %v856_v24, %v1125_v4  ;;  %v928_v7 = vadd.f32 %v927_v38, %v1129_v5 }
 0x325   :  { %v858_v39 = vpop.f32.mrf.mxu0  ;;  %v929_v20 = vpop.f32.mrf.mxu1 }
 0x326   :  { %vm932_vm3 = vcmp.gt.f32.partialorder %v857_v59, 0.0  ;;  %v936_v47 = vmul.f32 %v857_v59, %v1146_v10  ;;  %vm934_vm4 = vcmp.gt.f32.partialorder %v928_v7, 0.0  ;;  %v938_v21 = vmul.f32 %v928_v7, %v1146_v10 }
 0x327   :  { %v859_v49 = vadd.f32 %v858_v39, %v1121_v2  ;;  %v930_v50 = vadd.f32 %v929_v20, %v1123_v3 }
 0x328   :  { %v940_v28 = vsel %vm932_vm3, %v857_v59, %v936_v47  ;;  %v942_v22 = vsel %vm934_vm4, %v928_v7, %v938_v21 }
 0x329   :  { %944 = vst [vmem:[#allocation9] sm:$0xff] %v940_v28  ;;  %946 = vst [vmem:[#allocation9 + $0x10] sm:$0xff] %v942_v22  ;;  %vm933_vm0 = vcmp.gt.f32.partialorder %v859_v49, 0.0  ;;  %v937_v4 = vmul.f32 %v859_v49, %v1146_v10  ;;  %vm935_vm5 = vcmp.gt.f32.partialorder %v930_v50, 0.0  ;;  %v939_v5 = vmul.f32 %v930_v50, %v1146_v10 }
 0x32b   :  { %v941_v51 = vsel %vm933_vm0, %v859_v49, %v937_v4  ;;  %v943_v52 = vsel %vm935_vm5, %v930_v50, %v939_v5 }
 0x32c   :  { %945 = vst [vmem:[#allocation9 + $0x8] sm:$0xff] %v941_v51  ;;  %947 = vst [vmem:[#allocation9 + $0x18] sm:$0xff] %v943_v52 }
 0x32d   :  { %1038 = shalt.err (!%p1035_p0)
}
 0x32e   :  { %957 = dma.vmem_to_hbm [thread:$0]  %s955_s30, 512, %s1456_s8, [#allocation6]  }
 0x32f   :  { %1051 = dma.done.wait [#allocation6], 512  }
 0x330   :  { %1052 = vsyncadd [#allocation6], 4294966784 }
 0x331   :  { %961 = vsyncpa [#allocation5], 1 }
 0x332   :  { %962 = vsyncpa [#allocation8], 1 }
 0x333   :  { %963 = vsyncpa [#allocation6], 1 }

</bundles_post_ra>
